<compile_context>
chip_gen: v6e
topology: v6e:2x2x1
jax: 0.10.0
libtpu: 0.0.40
codegen_flags: <defaults>
</compile_context>

<pallas_src>
from typing import NamedTuple

import jax
import jax.numpy as jnp
from jax.experimental import pallas as pl
from jax.experimental.pallas import tpu as pltpu

_LANE = 128
_TILE_M_GRAN = 16          # bf16 sublane-packed granularity for the batch tile
_MIN_SPLIT_ROWS = 128      # split batches >= 2*this into >=2 tiles (2-TC v7x)


def _round_up(x, m):
    return (x + m - 1) // m * m


def _cdiv(a, b):
    return (a + b - 1) // b


def _vmem_capacity_bytes():
    try:
        return int(pltpu.get_tpu_info().vmem_capacity_bytes)
    except Exception:
        return 64 * 1024 * 1024  # conservative (v7x per-TC VMEM)


def _buffered_one_supported():
    """True if pl.BlockSpec accepts pipeline_mode=pl.Buffered(1)."""
    if not hasattr(pl, "Buffered"):
        return False
    try:
        pl.BlockSpec((8, 128), lambda i: (0, 0), pipeline_mode=pl.Buffered(1))
        return True
    except Exception:
        return False


_SINGLE_BUFFER_OK = _buffered_one_supported()


# ----------------------------------------------------------------------------- kernel
def mlp_kernel(x_ref, w1_ref, b1_ref, w2_ref, b2_ref, o_ref):
    # layer 1: (tile_m, in_p) @ (in_p, hid_p) on the MXU, f32 accumulation
    x = x_ref[...].astype(w1_ref.dtype)
    h = jnp.dot(x, w1_ref[...], preferred_element_type=jnp.float32)
    h = jnp.maximum(h + b1_ref[...], 0.0)                     # bias + ReLU in f32 (VPU)
    # layer 2: cast activations to the weight dtype (bf16) for the MXU, f32 acc
    out = jnp.dot(h.astype(w2_ref.dtype), w2_ref[...],
                  preferred_element_type=jnp.float32)
    out = out + b2_ref[...]
    # exact sigmoid via a single EUP transcendental (tanh); no divide, no approx recip
    o_ref[...] = (0.5 * jnp.tanh(0.5 * out) + 0.5).astype(o_ref.dtype)


# --------------------------------------------------------------------------- wrapper
class PreparedMLP(NamedTuple):
    w1: jax.Array          # (in_p, hid_p)  compute dtype, zero-padded
    b1: jax.Array          # (1, hid_p)     f32, zero-padded
    w2: jax.Array          # (hid_p, out_p) compute dtype, zero-padded
    b2: jax.Array          # (1, out_p)     f32, zero-padded
    in_size: int
    hidden_size: int
    output_size: int


def prepare_params(w1, b1, w2, b2, compute_dtype=jnp.bfloat16):
    """One-time pad-to-128 + cast of the weights (hoisted out of the forward pass)."""
    in_size, hidden = w1.shape
    hid_w, out_size = w2.shape
    assert hid_w == hidden
    in_p = _round_up(in_size, _LANE)
    hid_p = _round_up(hidden, _LANE)
    out_p = _round_up(out_size, _LANE)

    w1_p = jnp.zeros((in_p, hid_p), compute_dtype).at[:in_size, :hidden].set(
        w1.astype(compute_dtype))
    w2_p = jnp.zeros((hid_p, out_p), compute_dtype).at[:hidden, :out_size].set(
        w2.astype(compute_dtype))
    b1_p = jnp.zeros((1, hid_p), jnp.float32).at[:, :hidden].set(
        b1.reshape(1, -1).astype(jnp.float32))
    b2_p = jnp.zeros((1, out_p), jnp.float32).at[:, :out_size].set(
        b2.reshape(1, -1).astype(jnp.float32))
    return PreparedMLP(w1_p, b1_p, w2_p, b2_p, in_size, hidden, out_size)


def _make_mlp_call(tile_m, in_p, hid_p, out_p, b_pad, out_dtype, vmem_limit,
                   single_buffer):
    """Build the pallas_call for the given tiling."""
    const_kw = {}
    if single_buffer:
        const_kw = dict(pipeline_mode=pl.Buffered(1))   # grid-invariant: 1 buffer

    in_specs = [
        pl.BlockSpec((tile_m, in_p), lambda i: (i, 0)),               # x batch tile
        pl.BlockSpec((in_p, hid_p),  lambda i: (0, 0), **const_kw),   # W1 (resident)
        pl.BlockSpec((1, hid_p),     lambda i: (0, 0), **const_kw),   # b1
        pl.BlockSpec((hid_p, out_p), lambda i: (0, 0), **const_kw),   # W2 (resident)
        pl.BlockSpec((1, out_p),     lambda i: (0, 0), **const_kw),   # b2
    ]
    return pl.pallas_call(
        mlp_kernel,
        out_shape=jax.ShapeDtypeStruct((b_pad, out_p), out_dtype),
        grid_spec=pltpu.PrefetchScalarGridSpec(
            num_scalar_prefetch=0,
            grid=(b_pad // tile_m,),
            in_specs=in_specs,
            out_specs=pl.BlockSpec((tile_m, out_p), lambda i: (i, 0)),
        ),
        compiler_params=pltpu.CompilerParams(
            dimension_semantics=("parallel",),   # batch tiles shard across TCs
            vmem_limit_bytes=vmem_limit,
        ),
    )


def mlp_forward(x, params: PreparedMLP, *, tile_m=512, out_dtype=None):
    """x: [B, in_size]; params from prepare_params() -> [B, output_size]."""
    B, in_size = x.shape
    assert in_size == params.in_size
    in_p, hid_p = params.w1.shape
    _, out_p = params.w2.shape
    out_size = params.output_size
    out_dtype = x.dtype if out_dtype is None else jnp.dtype(out_dtype)

    cdt = params.w1.dtype
    cbytes = jnp.dtype(cdt).itemsize
    xbytes = max(jnp.dtype(x.dtype).itemsize, cbytes)   # worst case (padded or raw x)
    obytes = jnp.dtype(out_dtype).itemsize

    w_bufs = 1 if _SINGLE_BUFFER_OK else 2

    def working_set(tm, wb):
        x_cast = tm * in_p * cbytes if x.dtype != cdt else 0   # in-kernel bf16 copy
        return (
            2 * tm * in_p * xbytes                  # x tile (double-buffered input)
            + x_cast
            + 2 * tm * out_p * obytes               # out tile (double-buffered output)
            + wb * (in_p * hid_p + hid_p * out_p) * cbytes   # W1 + W2
            + wb * (hid_p + out_p) * 4                        # biases (f32)
            + tm * hid_p * 4                        # f32 layer-1 activations
            + tm * hid_p * cbytes                   # bf16 copy of activations (matmul2)
            + tm * out_p * 4                        # f32 pre-sigmoid accumulator
        )

    vmem_cap = _vmem_capacity_bytes()
    budget = (vmem_cap * 3) // 4                    # ~96 MiB on v5e/v6e, ~48 MiB on v7x

    # M tile: multiple of 16 (bf16 sublane packing), at most the 16-aligned batch,
    # shrunk until the working set fits the generation-aware budget.
    tile_max = _round_up(max(int(tile_m), _TILE_M_GRAN), _TILE_M_GRAN)
    tile_max = min(tile_max, _round_up(B, _TILE_M_GRAN))
    while tile_max > _TILE_M_GRAN and working_set(tile_max, w_bufs) > budget:
        tile_max = _round_up(tile_max // 2, _TILE_M_GRAN)
    # TODO(synk): if W1/W2 alone exceed the VMEM budget (very wide MLPs on v7x), add a
    # hidden-dim "arbitrary" grid axis with an f32 accumulator instead of only
    # shrinking tile_m.

    # Tile count: minimize padding waste; keep an even number of tiles (>=2 for
    # moderately large batches) so both v7x TensorCores get work.
    n_tiles = _cdiv(B, tile_max)
    if B >= 2 * _MIN_SPLIT_ROWS:
        n_tiles = max(n_tiles, 2)
    if n_tiles > 1 and n_tiles % 2 == 1:
        n_tiles += 1
    tile_m = _round_up(_cdiv(B, n_tiles), _TILE_M_GRAN)
    b_pad = n_tiles * tile_m

    vmem_limit = int(min(vmem_cap,
                         max(32 * 1024 * 1024, 2 * working_set(tile_m, w_bufs))))

    # x path: feed raw x when already lane-dense and tile-aligned (cast happens in
    # the kernel); otherwise zero-pad into the compute dtype.
    if in_p == in_size and b_pad == B:
        x_in = x
    else:
        x_in = jnp.zeros((b_pad, in_p), cdt).at[:B, :in_size].set(x.astype(cdt))

    args = (x_in, params.w1, params.b1, params.w2, params.b2)
    try:
        out_padded = _make_mlp_call(tile_m, in_p, hid_p, out_p, b_pad, out_dtype,
                                    vmem_limit, _SINGLE_BUFFER_OK)(*args)
    except Exception:
        if not _SINGLE_BUFFER_OK:
            raise
        # fall back to default (double) buffering if Buffered(1) is rejected
        out_padded = _make_mlp_call(tile_m, in_p, hid_p, out_p, b_pad, out_dtype,
                                    vmem_limit, False)(*args)

    return out_padded[:B, :out_size]


def init_params(key, input_size, hidden_size, output_size, dtype=jnp.float32):
    """Deterministic PyTorch-style (uniform +/- 1/sqrt(fan_in)) init; weights stored
    pre-transposed as [in_features, out_features]."""
    k1, k2, k3, k4 = jax.random.split(key, 4)
    bound1 = 1.0 / jnp.sqrt(input_size)
    bound2 = 1.0 / jnp.sqrt(hidden_size)
    w1 = jax.random.uniform(k1, (input_size, hidden_size), dtype, -bound1, bound1)
    b1 = jax.random.uniform(k2, (1, hidden_size), dtype, -bound1, bound1)
    w2 = jax.random.uniform(k3, (hidden_size, output_size), dtype, -bound2, bound2)
    b2 = jax.random.uniform(k4, (1, output_size), dtype, -bound2, bound2)
    return w1, b1, w2, b2


if __name__ == "__main__":
    batch, input_size, hidden_size, output_size = 8, 16, 32, 4

    key = jax.random.PRNGKey(0)
    kx, kp = jax.random.split(key)
    x = jax.random.normal(kx, (batch, input_size), jnp.float32)
    w1, b1, w2, b2 = init_params(kp, input_size, hidden_size, output_size)

    params = prepare_params(w1, b1, w2, b2)          # one-time pad + bf16 cast
    out = mlp_forward(x, params)
    out = jax.block_until_ready(out)

    # reference check in plain JAX (f32); bf16 MXU inputs -> relaxed tolerance
    ref = jax.nn.sigmoid(jnp.maximum(x @ w1 + b1, 0.0) @ w2 + b2)
    assert out.shape == (batch, output_size)
    assert jnp.allclose(out, ref, atol=2e-2, rtol=2e-2), \
        float(jnp.max(jnp.abs(out - ref)))

    print("KERNEL_OK")
</pallas_src>

<mosaic_0001>
module attributes {stable_mosaic.version = 11 : i64} {
  func.func @mlp_kernel(%arg0: i32, %arg1: memref<16x128xbf16, #tpu.memory_space<vmem>>, %arg2: memref<128x128xbf16, #tpu.memory_space<vmem>>, %arg3: memref<1x128xf32, #tpu.memory_space<vmem>>, %arg4: memref<128x128xbf16, #tpu.memory_space<vmem>>, %arg5: memref<1x128xf32, #tpu.memory_space<vmem>>, %arg6: memref<16x128xf32, #tpu.memory_space<vmem>>) attributes {dimension_semantics = [#tpu.dimension_semantics<parallel>], iteration_bounds = array<i64: 1>, scalar_prefetch = 0 : i64, scratch_operands = 0 : i64, tpu.core_type = #tpu.core_type<tc>, window_params = [{transform_indices = @transform_0, window_bounds = array<i64: 16, 128>}, {pipeline_mode = #tpu.pipeline_mode<synchronous>, transform_indices = @transform_1, window_bounds = array<i64: 128, 128>}, {pipeline_mode = #tpu.pipeline_mode<synchronous>, transform_indices = @transform_2, window_bounds = array<i64: 1, 128>}, {pipeline_mode = #tpu.pipeline_mode<synchronous>, transform_indices = @transform_3, window_bounds = array<i64: 128, 128>}, {pipeline_mode = #tpu.pipeline_mode<synchronous>, transform_indices = @transform_4, window_bounds = array<i64: 1, 128>}, {transform_indices = @transform_5, window_bounds = array<i64: 16, 128>}]} {
    %c0 = arith.constant 0 : index
    %c0_0 = arith.constant 0 : index
    %0 = vector.load %arg1[%c0, %c0_0] : memref<16x128xbf16, #tpu.memory_space<vmem>>, vector<16x128xbf16>
    %c0_1 = arith.constant 0 : index
    %c0_2 = arith.constant 0 : index
    %1 = vector.load %arg2[%c0_1, %c0_2] : memref<128x128xbf16, #tpu.memory_space<vmem>>, vector<128x128xbf16>
    %cst = arith.constant dense<0.000000e+00> : vector<16x128xf32>
    %2 = tpu.matmul %0, %1, %cst {dimension_numbers = #tpu.dot_dimension_numbers<[1], [0], [0], [1], [0, 0, 1, 1], [], []>} : vector<16x128xbf16>, vector<128x128xbf16>, vector<16x128xf32> -> vector<16x128xf32>
    %c0_3 = arith.constant 0 : index
    %c0_4 = arith.constant 0 : index
    %3 = vector.load %arg3[%c0_3, %c0_4] : memref<1x128xf32, #tpu.memory_space<vmem>>, vector<1x128xf32>
    %4 = vector.broadcast %3 : vector<1x128xf32> to vector<16x128xf32>
    %5 = arith.addf %2, %4 : vector<16x128xf32>
    %cst_5 = arith.constant 0.000000e+00 : f32
    %6 = vector.broadcast %cst_5 : f32 to vector<16x128xf32>
    %7 = arith.maximumf %5, %6 : vector<16x128xf32>
    %8 = arith.truncf %7 : vector<16x128xf32> to vector<16x128xbf16>
    %c0_6 = arith.constant 0 : index
    %c0_7 = arith.constant 0 : index
    %9 = vector.load %arg4[%c0_6, %c0_7] : memref<128x128xbf16, #tpu.memory_space<vmem>>, vector<128x128xbf16>
    %cst_8 = arith.constant dense<0.000000e+00> : vector<16x128xf32>
    %10 = tpu.matmul %8, %9, %cst_8 {dimension_numbers = #tpu.dot_dimension_numbers<[1], [0], [0], [1], [0, 0, 1, 1], [], []>} : vector<16x128xbf16>, vector<128x128xbf16>, vector<16x128xf32> -> vector<16x128xf32>
    %c0_9 = arith.constant 0 : index
    %c0_10 = arith.constant 0 : index
    %11 = vector.load %arg5[%c0_9, %c0_10] : memref<1x128xf32, #tpu.memory_space<vmem>>, vector<1x128xf32>
    %12 = vector.broadcast %11 : vector<1x128xf32> to vector<16x128xf32>
    %13 = arith.addf %10, %12 : vector<16x128xf32>
    %cst_11 = arith.constant 5.000000e-01 : f32
    %14 = vector.broadcast %cst_11 : f32 to vector<16x128xf32>
    %15 = arith.mulf %14, %13 : vector<16x128xf32>
    %16 = math.tanh %15 : vector<16x128xf32>
    %cst_12 = arith.constant 5.000000e-01 : f32
    %17 = vector.broadcast %cst_12 : f32 to vector<16x128xf32>
    %18 = arith.mulf %17, %16 : vector<16x128xf32>
    %cst_13 = arith.constant 5.000000e-01 : f32
    %19 = vector.broadcast %cst_13 : f32 to vector<16x128xf32>
    %20 = arith.addf %18, %19 : vector<16x128xf32>
    %c0_14 = arith.constant 0 : index
    %c0_15 = arith.constant 0 : index
    %21 = vector.load %arg6[%c0_14, %c0_15] : memref<16x128xf32, #tpu.memory_space<vmem>>, vector<16x128xf32>
    tpu.vector_store %arg6[%c0_14, %c0_15], %20 {strides = array<i32>} : memref<16x128xf32, #tpu.memory_space<vmem>>, vector<16x128xf32>,
    return
  }
  func.func @transform_0(%arg0: i32) -> (i32, i32) {
    %c0_i32 = arith.constant 0 : i32
    %c0_i32_0 = arith.constant 0 : i32
    return %arg0, %c0_i32 : i32, i32
  }
  func.func @transform_1(%arg0: i32) -> (i32, i32) {
    %c0_i32 = arith.constant 0 : i32
    %c0_i32_0 = arith.constant 0 : i32
    %c0_i32_1 = arith.constant 0 : i32
    return %c0_i32, %c0_i32_0 : i32, i32
  }
  func.func @transform_2(%arg0: i32) -> (i32, i32) {
    %c0_i32 = arith.constant 0 : i32
    %c0_i32_0 = arith.constant 0 : i32
    %c0_i32_1 = arith.constant 0 : i32
    return %c0_i32, %c0_i32_0 : i32, i32
  }
  func.func @transform_3(%arg0: i32) -> (i32, i32) {
    %c0_i32 = arith.constant 0 : i32
    %c0_i32_0 = arith.constant 0 : i32
    %c0_i32_1 = arith.constant 0 : i32
    return %c0_i32, %c0_i32_0 : i32, i32
  }
  func.func @transform_4(%arg0: i32) -> (i32, i32) {
    %c0_i32 = arith.constant 0 : i32
    %c0_i32_0 = arith.constant 0 : i32
    %c0_i32_1 = arith.constant 0 : i32
    return %c0_i32, %c0_i32_0 : i32, i32
  }
  func.func @transform_5(%arg0: i32) -> (i32, i32) {
    %c0_i32 = arith.constant 0 : i32
    %c0_i32_0 = arith.constant 0 : i32
    return %arg0, %c0_i32 : i32, i32
  }
}

module attributes {stable_mosaic.version = 11 : i64} {
  func.func @mlp_kernel(%arg0: i32, %arg1: memref<16x128xbf16, #tpu.memory_space<vmem>>, %arg2: memref<128x128xbf16, #tpu.memory_space<vmem>>, %arg3: memref<1x128xf32, #tpu.memory_space<vmem>>, %arg4: memref<128x128xbf16, #tpu.memory_space<vmem>>, %arg5: memref<1x128xf32, #tpu.memory_space<vmem>>, %arg6: memref<16x128xf32, #tpu.memory_space<vmem>>) attributes {dimension_semantics = [#tpu.dimension_semantics<parallel>], iteration_bounds = array<i64: 1>, scalar_prefetch = 0 : i64, scratch_operands = 0 : i64, tpu.core_type = #tpu.core_type<tc>, window_params = [{transform_indices = @transform_0, window_bounds = array<i64: 16, 128>}, {pipeline_mode = #tpu.pipeline_mode<synchronous>, transform_indices = @transform_1, window_bounds = array<i64: 128, 128>}, {pipeline_mode = #tpu.pipeline_mode<synchronous>, transform_indices = @transform_2, window_bounds = array<i64: 1, 128>}, {pipeline_mode = #tpu.pipeline_mode<synchronous>, transform_indices = @transform_3, window_bounds = array<i64: 128, 128>}, {pipeline_mode = #tpu.pipeline_mode<synchronous>, transform_indices = @transform_4, window_bounds = array<i64: 1, 128>}, {transform_indices = @transform_5, window_bounds = array<i64: 16, 128>}]} {
    %c0 = arith.constant 0 : index
    %c0_0 = arith.constant 0 : index
    %0 = vector.load %arg1[%c0, %c0_0] : memref<16x128xbf16, #tpu.memory_space<vmem>>, vector<16x128xbf16>
    %c0_1 = arith.constant 0 : index
    %c0_2 = arith.constant 0 : index
    %1 = vector.load %arg2[%c0_1, %c0_2] : memref<128x128xbf16, #tpu.memory_space<vmem>>, vector<128x128xbf16>
    %cst = arith.constant dense<0.000000e+00> : vector<16x128xf32>
    %2 = tpu.matmul %0, %1, %cst {dimension_numbers = #tpu.dot_dimension_numbers<[1], [0], [0], [1], [0, 0, 1, 1], [], []>} : vector<16x128xbf16>, vector<128x128xbf16>, vector<16x128xf32> -> vector<16x128xf32>
    %c0_3 = arith.constant 0 : index
    %c0_4 = arith.constant 0 : index
    %3 = vector.load %arg3[%c0_3, %c0_4] : memref<1x128xf32, #tpu.memory_space<vmem>>, vector<1x128xf32>
    %4 = vector.broadcast %3 : vector<1x128xf32> to vector<16x128xf32>
    %5 = arith.addf %2, %4 : vector<16x128xf32>
    %cst_5 = arith.constant 0.000000e+00 : f32
    %6 = vector.broadcast %cst_5 : f32 to vector<16x128xf32>
    %7 = arith.maximumf %5, %6 : vector<16x128xf32>
    %8 = arith.truncf %7 : vector<16x128xf32> to vector<16x128xbf16>
    %c0_6 = arith.constant 0 : index
    %c0_7 = arith.constant 0 : index
    %9 = vector.load %arg4[%c0_6, %c0_7] : memref<128x128xbf16, #tpu.memory_space<vmem>>, vector<128x128xbf16>
    %cst_8 = arith.constant dense<0.000000e+00> : vector<16x128xf32>
    %10 = tpu.matmul %8, %9, %cst_8 {dimension_numbers = #tpu.dot_dimension_numbers<[1], [0], [0], [1], [0, 0, 1, 1], [], []>} : vector<16x128xbf16>, vector<128x128xbf16>, vector<16x128xf32> -> vector<16x128xf32>
    %c0_9 = arith.constant 0 : index
    %c0_10 = arith.constant 0 : index
    %11 = vector.load %arg5[%c0_9, %c0_10] : memref<1x128xf32, #tpu.memory_space<vmem>>, vector<1x128xf32>
    %12 = vector.broadcast %11 : vector<1x128xf32> to vector<16x128xf32>
    %13 = arith.addf %10, %12 : vector<16x128xf32>
    %cst_11 = arith.constant 5.000000e-01 : f32
    %14 = vector.broadcast %cst_11 : f32 to vector<16x128xf32>
    %15 = arith.mulf %14, %13 : vector<16x128xf32>
    %16 = math.tanh %15 : vector<16x128xf32>
    %cst_12 = arith.constant 5.000000e-01 : f32
    %17 = vector.broadcast %cst_12 : f32 to vector<16x128xf32>
    %18 = arith.mulf %17, %16 : vector<16x128xf32>
    %cst_13 = arith.constant 5.000000e-01 : f32
    %19 = vector.broadcast %cst_13 : f32 to vector<16x128xf32>
    %20 = arith.addf %18, %19 : vector<16x128xf32>
    %c0_14 = arith.constant 0 : index
    %c0_15 = arith.constant 0 : index
    %21 = vector.load %arg6[%c0_14, %c0_15] : memref<16x128xf32, #tpu.memory_space<vmem>>, vector<16x128xf32>
    tpu.vector_store %arg6[%c0_14, %c0_15], %20 {strides = array<i32>} : memref<16x128xf32, #tpu.memory_space<vmem>>, vector<16x128xf32>,
    return
  }
  func.func @transform_0(%arg0: i32) -> (i32, i32) {
    %c0_i32 = arith.constant 0 : i32
    %c0_i32_0 = arith.constant 0 : i32
    return %arg0, %c0_i32 : i32, i32
  }
  func.func @transform_1(%arg0: i32) -> (i32, i32) {
    %c0_i32 = arith.constant 0 : i32
    %c0_i32_0 = arith.constant 0 : i32
    %c0_i32_1 = arith.constant 0 : i32
    return %c0_i32, %c0_i32_0 : i32, i32
  }
  func.func @transform_2(%arg0: i32) -> (i32, i32) {
    %c0_i32 = arith.constant 0 : i32
    %c0_i32_0 = arith.constant 0 : i32
    %c0_i32_1 = arith.constant 0 : i32
    return %c0_i32, %c0_i32_0 : i32, i32
  }
  func.func @transform_3(%arg0: i32) -> (i32, i32) {
    %c0_i32 = arith.constant 0 : i32
    %c0_i32_0 = arith.constant 0 : i32
    %c0_i32_1 = arith.constant 0 : i32
    return %c0_i32, %c0_i32_0 : i32, i32
  }
  func.func @transform_4(%arg0: i32) -> (i32, i32) {
    %c0_i32 = arith.constant 0 : i32
    %c0_i32_0 = arith.constant 0 : i32
    %c0_i32_1 = arith.constant 0 : i32
    return %c0_i32, %c0_i32_0 : i32, i32
  }
  func.func @transform_5(%arg0: i32) -> (i32, i32) {
    %c0_i32 = arith.constant 0 : i32
    %c0_i32_0 = arith.constant 0 : i32
    return %arg0, %c0_i32 : i32, i32
  }
}

</mosaic_0001>

<bundles_post_ra>
// kernel: tpu_custom_call.1
= control target key start
LH: loop header
LB: loop body
LE: loop exit
PB: predicated region body
PF: predicated region fallthrough
CT: control target
= control target key end

     0   :  { %10 = vsyncpa [#allocation3], 0  ;;  %s578_s0 = inlined_call_operand.hbm [shape: bf16[16,128], index: 0, kind: input, shape index: {}]   ;;  %s579_s1 = inlined_call_operand.hbm [shape: bf16[128,128], index: 1, kind: input, shape index: {}]   ;;  %s580_s2 = inlined_call_operand.vmem [shape: f32[1,128], index: 2, kind: input, shape index: {}]   ;;  %s581_s3 = inlined_call_operand.hbm [shape: bf16[128,128], index: 3, kind: input, shape index: {}]   ;;  %s582_s4 = inlined_call_operand.vmem [shape: f32[1,128], index: 4, kind: input, shape index: {}]   ;;  %s583_s5 = inlined_call_operand.hbm [shape: f32[16,128], index: 5, kind: output, shape index: {}]  }
   0x1   :  { %11 = vsyncpa [#allocation6], 0 }
   0x2   :  { %12 = vsyncpa [#allocation4], 0  ;;  %s520_s18 = smov [#allocation5]   ;;  %s521_s20 = smov [#allocation2]  }
   0x3   :  { %s30_s19 = sshll.u32 %s520_s18, 4  ;;  %s18_s21 = sshll.u32 %s521_s20, 4  ;;  %s31_s19 = int_to_ptr.vmem [resolvable:$true] %s30_s19  ;;  %s19_s21 = int_to_ptr.vmem [resolvable:$true] %s18_s21 }
   0x4   :  { %s442_s22 = scalar_lea.vmem %s31_s19, 1024  ;;  %p447_p1 = scmp.lt.s32.totalorder %s31_s19, %s31_s19 }
   0x5   :  { %p443_p0 = scmp.ne.s32.totalorder %s31_s19, %s442_s22  ;;  %p448_p2 = scmp.lt.s32.totalorder %s442_s22, %s442_s22 }
   0x7   :  { %p449_p3 = por %p448_p2, %p447_p1 }
   0x9   :  { %p450_p4 = pnand %p449_p3, %p443_p0 }
   0xb   :  { %453 = shalt.err (!%p450_p4)
}
   0xc   :  { %s522_s23 = smov 64   ;;  %s523_s24 = smov 4  }
   0xd   :  { %36 = dma.hbm_to_vmem [thread:$0]  %s579_s1, 1024, %s31_s19, [#allocation6], %s522_s23, %s522_s23, %s523_s24  }
   0xe   :  { %s462_s27 = scalar_lea.vmem %s19_s21, 128  ;;  %p467_p6 = scmp.lt.s32.totalorder %s19_s21, %s19_s21 }
   0xf   :  { %p463_p5 = scmp.ne.s32.totalorder %s19_s21, %s462_s27  ;;  %p468_p7 = scmp.lt.s32.totalorder %s462_s27, %s462_s27 }
  0x11   :  { %p469_p8 = por %p468_p7, %p467_p6 }
  0x13   :  { %p470_p9 = pnand %p469_p8, %p463_p5 }
  0x15   :  { %473 = shalt.err (!%p470_p9)
}
  0x16   :  { %24 = dma.hbm_to_vmem [thread:$0]  %s578_s0, 128, %s19_s21, [#allocation3], %s522_s23, %s522_s23, %s523_s24  }
  0x17   :  { %s524_s30 = smov [#allocation7]  }
  0x18   :  { %s44_s6 = sshll.u32 %s524_s30, 4  ;;  %s45_s6 = int_to_ptr.vmem [resolvable:$true] %s44_s6 }
  0x19   :  { %s482_s7 = scalar_lea.vmem %s45_s6, 1024  ;;  %p487_p11 = scmp.lt.s32.totalorder %s45_s6, %s45_s6 }
  0x1a   :  { %p483_p10 = scmp.ne.s32.totalorder %s45_s6, %s482_s7  ;;  %p488_p12 = scmp.lt.s32.totalorder %s482_s7, %s482_s7 }
  0x1c   :  { %p489_p13 = por %p488_p12, %p487_p11 }
  0x1e   :  { %p490_p0 = pnand %p489_p13, %p483_p10 }
  0x20   :  { %493 = shalt.err (!%p490_p0)
}
  0x21   :  { %50 = dma.hbm_to_vmem [thread:$0]  %s581_s3, 1024, %s45_s6, [#allocation6], %s522_s23, %s522_s23, %s523_s24  }
  0x22   :  { %514 = dma.done.wait [#allocation3], 128  }
  0x23   :  { %515 = vsyncadd [#allocation3], 4294967168 }
  0x24   :  { %516 = dma.done.wait [#allocation6], 2048  }
  0x25   :  { %517 = vsyncadd [#allocation6], 4294965248  ;;  %v525_v0 = vmov 0.0   ;;  %vm526_vm0 = vmmov 0   ;;  %v413_v1 = vld [vmem:[#allocation5 + $0x38] sm:$0xff]   ;;  %v414_v2 = vld [vmem:[#allocation5 + $0x30] sm:$0xff]  }
  0x26   :  { %363 = vmatprep.subr.bf16.mxu0 %v525_v0  ;;  %379 = vmatprep.mubr.msk.bf16.mxu0 %vm526_vm0, %v525_v0  ;;  %v415_v3 = vld [vmem:[#allocation5 + $0x28] sm:$0xff]   ;;  %v422_v4 = vld [vmem:[#allocation7 + $0x38] sm:$0xff]   ;;  %v416_v5 = vld [vmem:[#allocation5 + $0x20] sm:$0xff]  }
  0x27   :  { %383 = vmatprep.subr.bf16.mxu1 %v525_v0  ;;  %399 = vmatprep.mubr.msk.bf16.mxu1 %vm526_vm0, %v525_v0  ;;  %v423_v6 = vld [vmem:[#allocation7 + $0x30] sm:$0xff]   ;;  %v417_v7 = vld [vmem:[#allocation5 + $0x18] sm:$0xff]   ;;  %v424_v8 = vld [vmem:[#allocation7 + $0x28] sm:$0xff]  }
  0x28   :  { %364 = vmatpush3.bf16.msra.mxu0 %v413_v1  ;;  %384 = vmatpush3.bf16.msra.mxu1 %v422_v4  ;;  %v418_v9 = vld [vmem:[#allocation5 + $0x10] sm:$0xff]   ;;  %v425_v10 = vld [vmem:[#allocation7 + $0x20] sm:$0xff]   ;;  %v419_v11 = vld [vmem:[#allocation5 + $0x8] sm:$0xff]  }
  0x29   :  { %365 = vmatprep.subr.bf16.mxu0 %v525_v0  ;;  %385 = vmatprep.subr.bf16.mxu1 %v525_v0  ;;  %v426_v12 = vld [vmem:[#allocation7 + $0x18] sm:$0xff]   ;;  %v420_v13 = vld [vmem:[#allocation5] sm:$0xff]   ;;  %v427_v15 = vld [vmem:[#allocation7 + $0x10] sm:$0xff]  }
  0x2a   :  { %v421_v14 = vld [vmem:[#allocation2] sm:$0xff]   ;;  %v428_v16 = vld [vmem:[#allocation7 + $0x8] sm:$0xff]   ;;  %v429_v17 = vld [vmem:[#allocation7] sm:$0xff]  }
  0x2b   :  { %v326_v18 = vld [vmem:[%s580_s2] ss:$0 sm:$0xff]  ;;  %s527_s2 = smov [#allocation8]  }
  0x2c   :  { %366 = vmatpush3.bf16.msra.mxu0 %v414_v2  ;;  %386 = vmatpush3.bf16.msra.mxu1 %v423_v6  ;;  %v336_v28 = vld [vmem:[%s582_s4] ss:$0 sm:$0xff]  ;;  %s313_s11 = sshll.u32 %s527_s2, 4  ;;  %s314_s11 = int_to_ptr.vmem [resolvable:$true] %s313_s11 }
  0x2d   :  { %367 = vmatprep.subr.bf16.mxu0 %v525_v0  ;;  %387 = vmatprep.subr.bf16.mxu1 %v525_v0  ;;  %s494_s4 = scalar_lea.vmem %s314_s11, 256  ;;  %p499_p2 = scmp.lt.s32.totalorder %s314_s11, %s314_s11 }
  0x2e   :  { %p495_p1 = scmp.ne.s32.totalorder %s314_s11, %s494_s4  ;;  %p500_p3 = scmp.lt.s32.totalorder %s494_s4, %s494_s4 }
  0x30   :  { %368 = vmatpush3.bf16.msra.mxu0 %v415_v3  ;;  %388 = vmatpush3.bf16.msra.mxu1 %v424_v8  ;;  %p501_p4 = por %p500_p3, %p499_p2 }
  0x31   :  { %369 = vmatprep.subr.bf16.mxu0 %v525_v0  ;;  %389 = vmatprep.subr.bf16.mxu1 %v525_v0 }
  0x32   :  { %p502_p5 = pnand %p501_p4, %p495_p1 }
  0x34   :  { %370 = vmatpush3.bf16.msra.mxu0 %v416_v5  ;;  %390 = vmatpush3.bf16.msra.mxu1 %v425_v10 }
  0x35   :  { %371 = vmatprep.subr.bf16.mxu0 %v525_v0  ;;  %391 = vmatprep.subr.bf16.mxu1 %v525_v0 }
  0x38   :  { %372 = vmatpush3.bf16.msra.mxu0 %v417_v7  ;;  %392 = vmatpush3.bf16.msra.mxu1 %v426_v12 }
  0x39   :  { %373 = vmatprep.subr.bf16.mxu0 %v525_v0  ;;  %393 = vmatprep.subr.bf16.mxu1 %v525_v0 }
  0x3c   :  { %374 = vmatpush3.bf16.msra.mxu0 %v418_v9  ;;  %394 = vmatpush3.bf16.msra.mxu1 %v427_v15 }
  0x3d   :  { %375 = vmatprep.subr.bf16.mxu0 %v525_v0  ;;  %395 = vmatprep.subr.bf16.mxu1 %v525_v0 }
  0x40   :  { %376 = vmatpush3.bf16.msra.mxu0 %v419_v11  ;;  %396 = vmatpush3.bf16.msra.mxu1 %v428_v16 }
  0x41   :  { %377 = vmatprep.subr.bf16.mxu0 %v525_v0  ;;  %397 = vmatprep.subr.bf16.mxu1 %v525_v0 }
  0x44   :  { %378 = vmatpush3.bf16.msra.mxu0 %v420_v13  ;;  %398 = vmatpush3.bf16.msra.mxu1 %v429_v17 }
  0x47   :  { %380 = vmatmul.mubr.bf16.vlgmr.msra.gmra.mxu0 %v421_v14 }
 0x107   :  { %v176_v19 = vpop.f32.mrf.mxu0 }
 0x108   :  { %v177_v21 = vadd.f32 %v326_v18, %v176_v19 }
 0x109   :  { %v381_v20 = vpop.f32.mrf.mxu0 }
 0x10a   :  { %v183_v25 = vmax.f32 %v177_v21, 0.0 }
 0x10b   :  { %v179_v22 = vpop.f32.mrf.mxu0 }
 0x10c   :  { %v180_v23 = vadd.f32 %v326_v18, %v179_v22 }
 0x10d   :  { %v382_v24 = vpop.f32.mrf.mxu0 }
 0x10e   :  { %v184_v26 = vmax.f32 %v180_v23, 0.0 }
 0x110   :  { %v185_v27 = vpack.c.bf16 %v184_v26, %v183_v25 }
 0x112   :  { %400 = vmatmul.mubr.bf16.vlgmr.msra.gmra.mxu1 %v185_v27 }
 0x1d2   :  { %v291_v29 = vpop.f32.mrf.mxu1 }
 0x1d3   :  { %v292_v30 = vadd.f32 %v336_v28, %v291_v29 }
 0x1d4   :  { %v401_v31 = vpop.f32.mrf.mxu1 }
 0x1d5   :  { %v298_v32 = vmul.f32 0.5, %v292_v30 }
 0x1d6   :  { %v294_v33 = vpop.f32.mrf.mxu1 }
 0x1d7   :  { %430 = vtanh.f32 %v298_v32  ;;  %v295_v34 = vadd.f32 %v336_v28, %v294_v33 }
 0x1d8   :  { %v402_v35 = vpop.f32.mrf.mxu1 }
 0x1d9   :  { %v299_v36 = vmul.f32 0.5, %v295_v34 }
 0x1db   :  { %432 = vtanh.f32 %v299_v36 }
 0x1e4   :  { %v431_v37 = vpop.eup %430 }
 0x1e5   :  { %v302_v38 = vmul.f32 0.5, %v431_v37 }
 0x1e7   :  { %v304_v39 = vadd.f32 0.5, %v302_v38 }
 0x1e8   :  { %v433_v40 = vpop.eup %432 }
 0x1e9   :  { %306 = vst [vmem:[#allocation8] sm:$0xff] %v304_v39  ;;  %v303_v41 = vmul.f32 0.5, %v433_v40 }
 0x1eb   :  { %v305_v42 = vadd.f32 0.5, %v303_v41 }
 0x1ed   :  { %307 = vst [vmem:[#allocation8 + $0x8] sm:$0xff] %v305_v42 }
 0x1ee   :  { %505 = shalt.err (!%p502_p5)
}
 0x1ef   :  { %s528_s12 = smov 128   ;;  %s529_s13 = smov 8  }
 0x1f0   :  { %319 = dma.vmem_to_hbm [thread:$0]  %s314_s11, 256, %s583_s5, [#allocation4], %s528_s12, %s528_s12, %s529_s13  }
 0x1f1   :  { %518 = dma.done.wait [#allocation4], 256  }
 0x1f2   :  { %519 = vsyncadd [#allocation4], 4294967040 }
 0x1f3   :  { %323 = vsyncpa [#allocation3], 1 }
 0x1f4   :  { %324 = vsyncpa [#allocation6], 1 }
 0x1f5   :  { %325 = vsyncpa [#allocation4], 1 }

// kernel: tpu_custom_call.1
= control target key start
LH: loop header
LB: loop body
LE: loop exit
PB: predicated region body
PF: predicated region fallthrough
CT: control target
= control target key end

     0   :  { %10 = vsyncpa [#allocation3], 0  ;;  %s578_s0 = inlined_call_operand.hbm [shape: bf16[16,128], index: 0, kind: input, shape index: {}]   ;;  %s579_s1 = inlined_call_operand.hbm [shape: bf16[128,128], index: 1, kind: input, shape index: {}]   ;;  %s580_s2 = inlined_call_operand.vmem [shape: f32[1,128], index: 2, kind: input, shape index: {}]   ;;  %s581_s3 = inlined_call_operand.hbm [shape: bf16[128,128], index: 3, kind: input, shape index: {}]   ;;  %s582_s4 = inlined_call_operand.vmem [shape: f32[1,128], index: 4, kind: input, shape index: {}]   ;;  %s583_s5 = inlined_call_operand.hbm [shape: f32[16,128], index: 5, kind: output, shape index: {}]  }
   0x1   :  { %11 = vsyncpa [#allocation6], 0 }
   0x2   :  { %12 = vsyncpa [#allocation4], 0  ;;  %s520_s18 = smov [#allocation5]   ;;  %s521_s20 = smov [#allocation2]  }
   0x3   :  { %s30_s19 = sshll.u32 %s520_s18, 4  ;;  %s18_s21 = sshll.u32 %s521_s20, 4  ;;  %s31_s19 = int_to_ptr.vmem [resolvable:$true] %s30_s19  ;;  %s19_s21 = int_to_ptr.vmem [resolvable:$true] %s18_s21 }
   0x4   :  { %s442_s22 = scalar_lea.vmem %s31_s19, 1024  ;;  %p447_p1 = scmp.lt.s32.totalorder %s31_s19, %s31_s19 }
   0x5   :  { %p443_p0 = scmp.ne.s32.totalorder %s31_s19, %s442_s22  ;;  %p448_p2 = scmp.lt.s32.totalorder %s442_s22, %s442_s22 }
   0x7   :  { %p449_p3 = por %p448_p2, %p447_p1 }
   0x9   :  { %p450_p4 = pnand %p449_p3, %p443_p0 }
   0xb   :  { %453 = shalt.err (!%p450_p4)
}
   0xc   :  { %s522_s23 = smov 64   ;;  %s523_s24 = smov 4  }
   0xd   :  { %36 = dma.hbm_to_vmem [thread:$0]  %s579_s1, 1024, %s31_s19, [#allocation6], %s522_s23, %s522_s23, %s523_s24  }
   0xe   :  { %s462_s27 = scalar_lea.vmem %s19_s21, 128  ;;  %p467_p6 = scmp.lt.s32.totalorder %s19_s21, %s19_s21 }
   0xf   :  { %p463_p5 = scmp.ne.s32.totalorder %s19_s21, %s462_s27  ;;  %p468_p7 = scmp.lt.s32.totalorder %s462_s27, %s462_s27 }
  0x11   :  { %p469_p8 = por %p468_p7, %p467_p6 }
  0x13   :  { %p470_p9 = pnand %p469_p8, %p463_p5 }
  0x15   :  { %473 = shalt.err (!%p470_p9)
}
  0x16   :  { %24 = dma.hbm_to_vmem [thread:$0]  %s578_s0, 128, %s19_s21, [#allocation3], %s522_s23, %s522_s23, %s523_s24  }
  0x17   :  { %s524_s30 = smov [#allocation7]  }
  0x18   :  { %s44_s6 = sshll.u32 %s524_s30, 4  ;;  %s45_s6 = int_to_ptr.vmem [resolvable:$true] %s44_s6 }
  0x19   :  { %s482_s7 = scalar_lea.vmem %s45_s6, 1024  ;;  %p487_p11 = scmp.lt.s32.totalorder %s45_s6, %s45_s6 }
  0x1a   :  { %p483_p10 = scmp.ne.s32.totalorder %s45_s6, %s482_s7  ;;  %p488_p12 = scmp.lt.s32.totalorder %s482_s7, %s482_s7 }
  0x1c   :  { %p489_p13 = por %p488_p12, %p487_p11 }
  0x1e   :  { %p490_p0 = pnand %p489_p13, %p483_p10 }
  0x20   :  { %493 = shalt.err (!%p490_p0)
}
  0x21   :  { %50 = dma.hbm_to_vmem [thread:$0]  %s581_s3, 1024, %s45_s6, [#allocation6], %s522_s23, %s522_s23, %s523_s24  }
  0x22   :  { %514 = dma.done.wait [#allocation3], 128  }
  0x23   :  { %515 = vsyncadd [#allocation3], 4294967168 }
  0x24   :  { %516 = dma.done.wait [#allocation6], 2048  }
  0x25   :  { %517 = vsyncadd [#allocation6], 4294965248  ;;  %v525_v0 = vmov 0.0   ;;  %vm526_vm0 = vmmov 0   ;;  %v413_v1 = vld [vmem:[#allocation5 + $0x38] sm:$0xff]   ;;  %v414_v2 = vld [vmem:[#allocation5 + $0x30] sm:$0xff]  }
  0x26   :  { %363 = vmatprep.subr.bf16.mxu0 %v525_v0  ;;  %379 = vmatprep.mubr.msk.bf16.mxu0 %vm526_vm0, %v525_v0  ;;  %v415_v3 = vld [vmem:[#allocation5 + $0x28] sm:$0xff]   ;;  %v422_v4 = vld [vmem:[#allocation7 + $0x38] sm:$0xff]   ;;  %v416_v5 = vld [vmem:[#allocation5 + $0x20] sm:$0xff]  }
  0x27   :  { %383 = vmatprep.subr.bf16.mxu1 %v525_v0  ;;  %399 = vmatprep.mubr.msk.bf16.mxu1 %vm526_vm0, %v525_v0  ;;  %v423_v6 = vld [vmem:[#allocation7 + $0x30] sm:$0xff]   ;;  %v417_v7 = vld [vmem:[#allocation5 + $0x18] sm:$0xff]   ;;  %v424_v8 = vld [vmem:[#allocation7 + $0x28] sm:$0xff]  }
  0x28   :  { %364 = vmatpush3.bf16.msra.mxu0 %v413_v1  ;;  %384 = vmatpush3.bf16.msra.mxu1 %v422_v4  ;;  %v418_v9 = vld [vmem:[#allocation5 + $0x10] sm:$0xff]   ;;  %v425_v10 = vld [vmem:[#allocation7 + $0x20] sm:$0xff]   ;;  %v419_v11 = vld [vmem:[#allocation5 + $0x8] sm:$0xff]  }
  0x29   :  { %365 = vmatprep.subr.bf16.mxu0 %v525_v0  ;;  %385 = vmatprep.subr.bf16.mxu1 %v525_v0  ;;  %v426_v12 = vld [vmem:[#allocation7 + $0x18] sm:$0xff]   ;;  %v420_v13 = vld [vmem:[#allocation5] sm:$0xff]   ;;  %v427_v15 = vld [vmem:[#allocation7 + $0x10] sm:$0xff]  }
  0x2a   :  { %v421_v14 = vld [vmem:[#allocation2] sm:$0xff]   ;;  %v428_v16 = vld [vmem:[#allocation7 + $0x8] sm:$0xff]   ;;  %v429_v17 = vld [vmem:[#allocation7] sm:$0xff]  }
  0x2b   :  { %v326_v18 = vld [vmem:[%s580_s2] ss:$0 sm:$0xff]  ;;  %s527_s2 = smov [#allocation8]  }
  0x2c   :  { %366 = vmatpush3.bf16.msra.mxu0 %v414_v2  ;;  %386 = vmatpush3.bf16.msra.mxu1 %v423_v6  ;;  %v336_v28 = vld [vmem:[%s582_s4] ss:$0 sm:$0xff]  ;;  %s313_s11 = sshll.u32 %s527_s2, 4  ;;  %s314_s11 = int_to_ptr.vmem [resolvable:$true] %s313_s11 }
  0x2d   :  { %367 = vmatprep.subr.bf16.mxu0 %v525_v0  ;;  %387 = vmatprep.subr.bf16.mxu1 %v525_v0  ;;  %s494_s4 = scalar_lea.vmem %s314_s11, 256  ;;  %p499_p2 = scmp.lt.s32.totalorder %s314_s11, %s314_s11 }
  0x2e   :  { %p495_p1 = scmp.ne.s32.totalorder %s314_s11, %s494_s4  ;;  %p500_p3 = scmp.lt.s32.totalorder %s494_s4, %s494_s4 }
  0x30   :  { %368 = vmatpush3.bf16.msra.mxu0 %v415_v3  ;;  %388 = vmatpush3.bf16.msra.mxu1 %v424_v8  ;;  %p501_p4 = por %p500_p3, %p499_p2 }
  0x31   :  { %369 = vmatprep.subr.bf16.mxu0 %v525_v0  ;;  %389 = vmatprep.subr.bf16.mxu1 %v525_v0 }
  0x32   :  { %p502_p5 = pnand %p501_p4, %p495_p1 }
  0x34   :  { %370 = vmatpush3.bf16.msra.mxu0 %v416_v5  ;;  %390 = vmatpush3.bf16.msra.mxu1 %v425_v10 }
  0x35   :  { %371 = vmatprep.subr.bf16.mxu0 %v525_v0  ;;  %391 = vmatprep.subr.bf16.mxu1 %v525_v0 }
  0x38   :  { %372 = vmatpush3.bf16.msra.mxu0 %v417_v7  ;;  %392 = vmatpush3.bf16.msra.mxu1 %v426_v12 }
  0x39   :  { %373 = vmatprep.subr.bf16.mxu0 %v525_v0  ;;  %393 = vmatprep.subr.bf16.mxu1 %v525_v0 }
  0x3c   :  { %374 = vmatpush3.bf16.msra.mxu0 %v418_v9  ;;  %394 = vmatpush3.bf16.msra.mxu1 %v427_v15 }
  0x3d   :  { %375 = vmatprep.subr.bf16.mxu0 %v525_v0  ;;  %395 = vmatprep.subr.bf16.mxu1 %v525_v0 }
  0x40   :  { %376 = vmatpush3.bf16.msra.mxu0 %v419_v11  ;;  %396 = vmatpush3.bf16.msra.mxu1 %v428_v16 }
  0x41   :  { %377 = vmatprep.subr.bf16.mxu0 %v525_v0  ;;  %397 = vmatprep.subr.bf16.mxu1 %v525_v0 }
  0x44   :  { %378 = vmatpush3.bf16.msra.mxu0 %v420_v13  ;;  %398 = vmatpush3.bf16.msra.mxu1 %v429_v17 }
  0x47   :  { %380 = vmatmul.mubr.bf16.vlgmr.msra.gmra.mxu0 %v421_v14 }
 0x107   :  { %v176_v19 = vpop.f32.mrf.mxu0 }
 0x108   :  { %v177_v21 = vadd.f32 %v326_v18, %v176_v19 }
 0x109   :  { %v381_v20 = vpop.f32.mrf.mxu0 }
 0x10a   :  { %v183_v25 = vmax.f32 %v177_v21, 0.0 }
 0x10b   :  { %v179_v22 = vpop.f32.mrf.mxu0 }
 0x10c   :  { %v180_v23 = vadd.f32 %v326_v18, %v179_v22 }
 0x10d   :  { %v382_v24 = vpop.f32.mrf.mxu0 }
 0x10e   :  { %v184_v26 = vmax.f32 %v180_v23, 0.0 }
 0x110   :  { %v185_v27 = vpack.c.bf16 %v184_v26, %v183_v25 }
 0x112   :  { %400 = vmatmul.mubr.bf16.vlgmr.msra.gmra.mxu1 %v185_v27 }
 0x1d2   :  { %v291_v29 = vpop.f32.mrf.mxu1 }
 0x1d3   :  { %v292_v30 = vadd.f32 %v336_v28, %v291_v29 }
 0x1d4   :  { %v401_v31 = vpop.f32.mrf.mxu1 }
 0x1d5   :  { %v298_v32 = vmul.f32 0.5, %v292_v30 }
 0x1d6   :  { %v294_v33 = vpop.f32.mrf.mxu1 }
 0x1d7   :  { %430 = vtanh.f32 %v298_v32  ;;  %v295_v34 = vadd.f32 %v336_v28, %v294_v33 }
 0x1d8   :  { %v402_v35 = vpop.f32.mrf.mxu1 }
 0x1d9   :  { %v299_v36 = vmul.f32 0.5, %v295_v34 }
 0x1db   :  { %432 = vtanh.f32 %v299_v36 }
 0x1e4   :  { %v431_v37 = vpop.eup %430 }
 0x1e5   :  { %v302_v38 = vmul.f32 0.5, %v431_v37 }
 0x1e7   :  { %v304_v39 = vadd.f32 0.5, %v302_v38 }
 0x1e8   :  { %v433_v40 = vpop.eup %432 }
 0x1e9   :  { %306 = vst [vmem:[#allocation8] sm:$0xff] %v304_v39  ;;  %v303_v41 = vmul.f32 0.5, %v433_v40 }
 0x1eb   :  { %v305_v42 = vadd.f32 0.5, %v303_v41 }
 0x1ed   :  { %307 = vst [vmem:[#allocation8 + $0x8] sm:$0xff] %v305_v42 }
 0x1ee   :  { %505 = shalt.err (!%p502_p5)
}
 0x1ef   :  { %s528_s12 = smov 128   ;;  %s529_s13 = smov 8  }
 0x1f0   :  { %319 = dma.vmem_to_hbm [thread:$0]  %s314_s11, 256, %s583_s5, [#allocation4], %s528_s12, %s528_s12, %s529_s13  }
 0x1f1   :  { %518 = dma.done.wait [#allocation4], 256  }
 0x1f2   :  { %519 = vsyncadd [#allocation4], 4294967040 }
 0x1f3   :  { %323 = vsyncpa [#allocation3], 1 }
 0x1f4   :  { %324 = vsyncpa [#allocation6], 1 }
 0x1f5   :  { %325 = vsyncpa [#allocation4], 1 }

</bundles_post_ra>
